<compile_context>
chip_gen: v5e
topology: v5e:2x2
jax: 0.10.0
libtpu: 0.0.40
codegen_flags: <defaults>
</compile_context>

<pallas_src>
import jax
import jax.numpy as jnp
from jax.experimental import pallas as pl
from jax.experimental.pallas import tpu as pltpu


def _round_up(x, m):
    return ((x + m - 1) // m) * m


def actor_kernel(x_ref,
                 w1_ref, b1_ref,
                 w2_ref, b2_ref,
                 w3_ref, b3_ref,
                 bounds_ref, offset_ref,
                 out_ref):
    # Layer 1: Linear(2*state_dim -> 64) + ReLU (single fused dot; concat done
    # in the wrapper). Accumulate in f32 regardless of streaming dtype.
    h1 = jnp.dot(x_ref[...], w1_ref[...],
                 preferred_element_type=jnp.float32) + b1_ref[...]
    h1 = jnp.maximum(h1, 0.0)

    # Layer 2: Linear(64 -> 64) + ReLU
    h2 = jnp.dot(h1.astype(w2_ref.dtype), w2_ref[...],
                 preferred_element_type=jnp.float32) + b2_ref[...]
    h2 = jnp.maximum(h2, 0.0)

    # Layer 3: Linear(64 -> action_dim) + Tanh
    a = jnp.tanh(jnp.dot(h2.astype(w3_ref.dtype), w3_ref[...],
                         preferred_element_type=jnp.float32) + b3_ref[...])

    # Scale to action range: a * action_bounds + offset (broadcast over batch),
    # all in f32.
    out_ref[...] = a * bounds_ref[...] + offset_ref[...]


def actor_forward(state, goal, params, *, block_b=1024,
                  input_dtype=jnp.float32):
    """state, goal: (B, state_dim). Returns (B, action_dim) float32.

    input_dtype controls the HBM streaming dtype of the activations/weights
    (use jnp.bfloat16 to halve input bandwidth; accumulation stays f32).
    """
    (w1, b1, w2, b2, w3, b3, bounds, offset) = params
    B, state_dim = state.shape
    in_dim = 2 * state_dim
    action_dim = w3.shape[1]

    # Fuse concat([state, goal]) outside the kernel; cast to streaming dtype.
    x = jnp.concatenate([state, goal], axis=1).astype(input_dtype)

    # Optionally stream weights in the same narrow dtype (MXU is bf16-native).
    w1c = w1.astype(input_dtype)
    w2c = w2.astype(input_dtype)
    w3c = w3.astype(input_dtype)

    # Batch tile: multiple of 8 (sublane), capped by the (padded) batch size.
    tb = max(8, min(block_b, _round_up(B, 8)))
    b_pad = _round_up(B, tb)
    if b_pad != B:
        x = jnp.pad(x, ((0, b_pad - B), (0, 0)))

    grid = (b_pad // tb,)

    # Batch-tiled stream for x / out; full-shape resident blocks for params.
    def resident(shape):
        return pl.BlockSpec(shape, lambda i: (0, 0))

    in_specs = [
        pl.BlockSpec((tb, in_dim), lambda i: (i, 0)),  # x: streamed per tile
        resident(w1c.shape), resident(b1.shape),
        resident(w2c.shape), resident(b2.shape),
        resident(w3c.shape), resident(b3.shape),
        resident(bounds.shape), resident(offset.shape),
    ]
    out_specs = pl.BlockSpec((tb, action_dim), lambda i: (i, 0))

    out = pl.pallas_call(
        actor_kernel,
        out_shape=jax.ShapeDtypeStruct((b_pad, action_dim), jnp.float32),
        grid=grid,
        in_specs=in_specs,
        out_specs=out_specs,
        compiler_params=pltpu.CompilerParams(
            dimension_semantics=("parallel",),  # shard batch tiles across TCs
        ),
    )(x, w1c, b1, w2c, b2, w3c, b3, bounds, offset)

    return out[:B]


def make_params(key, state_dim, action_dim, hidden=64):
    """Deterministic synthetic parameters (PyTorch-like uniform fan-in init)."""
    ks = jax.random.split(key, 6)

    def lin(kw, kb, fan_in, fan_out):
        bound = 1.0 / jnp.sqrt(fan_in)
        w = jax.random.uniform(kw, (fan_in, fan_out), jnp.float32, -bound, bound)
        b = jax.random.uniform(kb, (1, fan_out), jnp.float32, -bound, bound)
        return w, b

    w1, b1 = lin(ks[0], ks[1], 2 * state_dim, hidden)
    w2, b2 = lin(ks[2], ks[3], hidden, hidden)
    w3, b3 = lin(ks[4], ks[5], hidden, action_dim)

    # action_bounds / offset: fixed (1, action_dim) tensors, broadcast over batch.
    bounds = jnp.full((1, action_dim), 2.0, jnp.float32)
    offset = jnp.full((1, action_dim), 0.5, jnp.float32)
    return (w1, b1, w2, b2, w3, b3, bounds, offset)


def actor_reference(state, goal, params):
    """Pure-JAX f32 reference for correctness checking."""
    (w1, b1, w2, b2, w3, b3, bounds, offset) = params
    x = jnp.concatenate([state, goal], axis=1)
    h1 = jnp.maximum(x @ w1 + b1, 0.0)
    h2 = jnp.maximum(h1 @ w2 + b2, 0.0)
    return jnp.tanh(h2 @ w3 + b3) * bounds + offset


if __name__ == "__main__":
    # NOTE: at B=2 the pallas_call dispatch overhead dwarfs the work; this size
    # is only for a correctness check. The kernel pays off for B in the
    # thousands, where the batch grid streams tiles at near HBM roofline.
    B, state_dim, action_dim = 2, 8, 4

    key = jax.random.PRNGKey(0)
    k_state, k_goal, k_params = jax.random.split(key, 3)

    state = jax.random.normal(k_state, (B, state_dim), jnp.float32)
    goal = jax.random.normal(k_goal, (B, state_dim), jnp.float32)
    params = make_params(k_params, state_dim, action_dim)

    ref = actor_reference(state, goal, params)

    # f32 streaming path: bitwise-faithful to the PyTorch module semantics.
    out = actor_forward(state, goal, params, input_dtype=jnp.float32)
    out = jax.block_until_ready(out)
    assert out.shape == (B, action_dim)
    assert jnp.allclose(out, ref, atol=1e-5, rtol=1e-5), (out, ref)

    # bf16 streaming path (bandwidth optimization): looser tolerance vs f32 ref.
    out_bf16 = actor_forward(state, goal, params, input_dtype=jnp.bfloat16)
    out_bf16 = jax.block_until_ready(out_bf16)
    assert out_bf16.shape == (B, action_dim)
    assert jnp.allclose(out_bf16, ref, atol=5e-2, rtol=5e-2), (out_bf16, ref)

    print("KERNEL_OK")
</pallas_src>

<mosaic_0001>
module attributes {stable_mosaic.version = 11 : i64} {
  func.func @actor_kernel(%arg0: i32, %arg1: memref<8x16xf32, #tpu.memory_space<vmem>>, %arg2: memref<16x64xf32, #tpu.memory_space<vmem>>, %arg3: memref<1x64xf32, #tpu.memory_space<vmem>>, %arg4: memref<64x64xf32, #tpu.memory_space<vmem>>, %arg5: memref<1x64xf32, #tpu.memory_space<vmem>>, %arg6: memref<64x4xf32, #tpu.memory_space<vmem>>, %arg7: memref<1x4xf32, #tpu.memory_space<vmem>>, %arg8: memref<1x4xf32, #tpu.memory_space<vmem>>, %arg9: memref<1x4xf32, #tpu.memory_space<vmem>>, %arg10: memref<8x4xf32, #tpu.memory_space<vmem>>) attributes {dimension_semantics = [#tpu.dimension_semantics<parallel>], iteration_bounds = array<i64: 1>, scalar_prefetch = 0 : i64, scratch_operands = 0 : i64, tpu.core_type = #tpu.core_type<tc>, window_params = [{transform_indices = @transform_0, window_bounds = array<i64: 8, 16>}, {pipeline_mode = #tpu.pipeline_mode<synchronous>, transform_indices = @transform_1, window_bounds = array<i64: 16, 64>}, {pipeline_mode = #tpu.pipeline_mode<synchronous>, transform_indices = @transform_2, window_bounds = array<i64: 1, 64>}, {pipeline_mode = #tpu.pipeline_mode<synchronous>, transform_indices = @transform_3, window_bounds = array<i64: 64, 64>}, {pipeline_mode = #tpu.pipeline_mode<synchronous>, transform_indices = @transform_4, window_bounds = array<i64: 1, 64>}, {pipeline_mode = #tpu.pipeline_mode<synchronous>, transform_indices = @transform_5, window_bounds = array<i64: 64, 4>}, {pipeline_mode = #tpu.pipeline_mode<synchronous>, transform_indices = @transform_6, window_bounds = array<i64: 1, 4>}, {pipeline_mode = #tpu.pipeline_mode<synchronous>, transform_indices = @transform_7, window_bounds = array<i64: 1, 4>}, {pipeline_mode = #tpu.pipeline_mode<synchronous>, transform_indices = @transform_8, window_bounds = array<i64: 1, 4>}, {transform_indices = @transform_9, window_bounds = array<i64: 8, 4>}]} {
    %c0 = arith.constant 0 : index
    %c0_0 = arith.constant 0 : index
    %0 = vector.load %arg1[%c0, %c0_0] : memref<8x16xf32, #tpu.memory_space<vmem>>, vector<8x16xf32>
    %c0_1 = arith.constant 0 : index
    %c0_2 = arith.constant 0 : index
    %1 = vector.load %arg2[%c0_1, %c0_2] : memref<16x64xf32, #tpu.memory_space<vmem>>, vector<16x64xf32>
    %cst = arith.constant dense<0.000000e+00> : vector<8x64xf32>
    %2 = tpu.matmul %0, %1, %cst {dimension_numbers = #tpu.dot_dimension_numbers<[1], [0], [0], [1], [0, 0, 1, 1], [], []>} : vector<8x16xf32>, vector<16x64xf32>, vector<8x64xf32> -> vector<8x64xf32>
    %c0_3 = arith.constant 0 : index
    %c0_4 = arith.constant 0 : index
    %3 = vector.load %arg3[%c0_3, %c0_4] : memref<1x64xf32, #tpu.memory_space<vmem>>, vector<1x64xf32>
    %4 = vector.broadcast %3 : vector<1x64xf32> to vector<8x64xf32>
    %5 = arith.addf %2, %4 : vector<8x64xf32>
    %cst_5 = arith.constant 0.000000e+00 : f32
    %6 = vector.broadcast %cst_5 : f32 to vector<8x64xf32>
    %7 = arith.maximumf %5, %6 : vector<8x64xf32>
    %c0_6 = arith.constant 0 : index
    %c0_7 = arith.constant 0 : index
    %8 = vector.load %arg4[%c0_6, %c0_7] : memref<64x64xf32, #tpu.memory_space<vmem>>, vector<64x64xf32>
    %cst_8 = arith.constant dense<0.000000e+00> : vector<8x64xf32>
    %9 = tpu.matmul %7, %8, %cst_8 {dimension_numbers = #tpu.dot_dimension_numbers<[1], [0], [0], [1], [0, 0, 1, 1], [], []>} : vector<8x64xf32>, vector<64x64xf32>, vector<8x64xf32> -> vector<8x64xf32>
    %c0_9 = arith.constant 0 : index
    %c0_10 = arith.constant 0 : index
    %10 = vector.load %arg5[%c0_9, %c0_10] : memref<1x64xf32, #tpu.memory_space<vmem>>, vector<1x64xf32>
    %11 = vector.broadcast %10 : vector<1x64xf32> to vector<8x64xf32>
    %12 = arith.addf %9, %11 : vector<8x64xf32>
    %cst_11 = arith.constant 0.000000e+00 : f32
    %13 = vector.broadcast %cst_11 : f32 to vector<8x64xf32>
    %14 = arith.maximumf %12, %13 : vector<8x64xf32>
    %c0_12 = arith.constant 0 : index
    %c0_13 = arith.constant 0 : index
    %15 = vector.load %arg6[%c0_12, %c0_13] : memref<64x4xf32, #tpu.memory_space<vmem>>, vector<64x4xf32>
    %cst_14 = arith.constant dense<0.000000e+00> : vector<8x4xf32>
    %16 = tpu.matmul %14, %15, %cst_14 {dimension_numbers = #tpu.dot_dimension_numbers<[1], [0], [0], [1], [0, 0, 1, 1], [], []>} : vector<8x64xf32>, vector<64x4xf32>, vector<8x4xf32> -> vector<8x4xf32>
    %c0_15 = arith.constant 0 : index
    %c0_16 = arith.constant 0 : index
    %17 = vector.load %arg7[%c0_15, %c0_16] : memref<1x4xf32, #tpu.memory_space<vmem>>, vector<1x4xf32>
    %18 = vector.broadcast %17 : vector<1x4xf32> to vector<8x4xf32>
    %19 = arith.addf %16, %18 : vector<8x4xf32>
    %20 = math.tanh %19 : vector<8x4xf32>
    %c0_17 = arith.constant 0 : index
    %c0_18 = arith.constant 0 : index
    %21 = vector.load %arg8[%c0_17, %c0_18] : memref<1x4xf32, #tpu.memory_space<vmem>>, vector<1x4xf32>
    %22 = vector.broadcast %21 : vector<1x4xf32> to vector<8x4xf32>
    %23 = arith.mulf %20, %22 : vector<8x4xf32>
    %c0_19 = arith.constant 0 : index
    %c0_20 = arith.constant 0 : index
    %24 = vector.load %arg9[%c0_19, %c0_20] : memref<1x4xf32, #tpu.memory_space<vmem>>, vector<1x4xf32>
    %25 = vector.broadcast %24 : vector<1x4xf32> to vector<8x4xf32>
    %26 = arith.addf %23, %25 : vector<8x4xf32>
    %c0_21 = arith.constant 0 : index
    %c0_22 = arith.constant 0 : index
    %27 = vector.load %arg10[%c0_21, %c0_22] : memref<8x4xf32, #tpu.memory_space<vmem>>, vector<8x4xf32>
    tpu.vector_store %arg10[%c0_21, %c0_22], %26 {strides = array<i32>} : memref<8x4xf32, #tpu.memory_space<vmem>>, vector<8x4xf32>,
    return
  }
  func.func @transform_0(%arg0: i32) -> (i32, i32) {
    %c0_i32 = arith.constant 0 : i32
    %c0_i32_0 = arith.constant 0 : i32
    return %arg0, %c0_i32 : i32, i32
  }
  func.func @transform_1(%arg0: i32) -> (i32, i32) {
    %c0_i32 = arith.constant 0 : i32
    %c0_i32_0 = arith.constant 0 : i32
    %c0_i32_1 = arith.constant 0 : i32
    return %c0_i32, %c0_i32_0 : i32, i32
  }
  func.func @transform_2(%arg0: i32) -> (i32, i32) {
    %c0_i32 = arith.constant 0 : i32
    %c0_i32_0 = arith.constant 0 : i32
    %c0_i32_1 = arith.constant 0 : i32
    return %c0_i32, %c0_i32_0 : i32, i32
  }
  func.func @transform_3(%arg0: i32) -> (i32, i32) {
    %c0_i32 = arith.constant 0 : i32
    %c0_i32_0 = arith.constant 0 : i32
    %c0_i32_1 = arith.constant 0 : i32
    return %c0_i32, %c0_i32_0 : i32, i32
  }
  func.func @transform_4(%arg0: i32) -> (i32, i32) {
    %c0_i32 = arith.constant 0 : i32
    %c0_i32_0 = arith.constant 0 : i32
    %c0_i32_1 = arith.constant 0 : i32
    return %c0_i32, %c0_i32_0 : i32, i32
  }
  func.func @transform_5(%arg0: i32) -> (i32, i32) {
    %c0_i32 = arith.constant 0 : i32
    %c0_i32_0 = arith.constant 0 : i32
    %c0_i32_1 = arith.constant 0 : i32
    return %c0_i32, %c0_i32_0 : i32, i32
  }
  func.func @transform_6(%arg0: i32) -> (i32, i32) {
    %c0_i32 = arith.constant 0 : i32
    %c0_i32_0 = arith.constant 0 : i32
    %c0_i32_1 = arith.constant 0 : i32
    return %c0_i32, %c0_i32_0 : i32, i32
  }
  func.func @transform_7(%arg0: i32) -> (i32, i32) {
    %c0_i32 = arith.constant 0 : i32
    %c0_i32_0 = arith.constant 0 : i32
    %c0_i32_1 = arith.constant 0 : i32
    return %c0_i32, %c0_i32_0 : i32, i32
  }
  func.func @transform_8(%arg0: i32) -> (i32, i32) {
    %c0_i32 = arith.constant 0 : i32
    %c0_i32_0 = arith.constant 0 : i32
    %c0_i32_1 = arith.constant 0 : i32
    return %c0_i32, %c0_i32_0 : i32, i32
  }
  func.func @transform_9(%arg0: i32) -> (i32, i32) {
    %c0_i32 = arith.constant 0 : i32
    %c0_i32_0 = arith.constant 0 : i32
    return %arg0, %c0_i32 : i32, i32
  }
}

</mosaic_0001>

<bundles_post_ra>
// kernel: tpu_custom_call.1
= control target key start
LH: loop header
LB: loop body
LE: loop exit
PB: predicated region body
PF: predicated region fallthrough
CT: control target
= control target key end

     0   :  { %14 = vsyncpa [#allocation3], 0  ;;  %s377_s0 = inlined_call_operand.hbm [shape: f32[8,16], index: 0, kind: input, shape index: {}]   ;;  %s378_s1 = inlined_call_operand.hbm [shape: f32[16,64], index: 1, kind: input, shape index: {}]   ;;  %s379_s2 = inlined_call_operand.vmem [shape: f32[1,64], index: 2, kind: input, shape index: {}]   ;;  %s380_s3 = inlined_call_operand.vmem [shape: f32[64,64], index: 3, kind: input, shape index: {}]   ;;  %s381_s4 = inlined_call_operand.vmem [shape: f32[1,64], index: 4, kind: input, shape index: {}]   ;;  %s382_s5 = inlined_call_operand.vmem [shape: f32[64,4], index: 5, kind: input, shape index: {}]   ;;  %s383_s6 = inlined_call_operand.vmem [shape: f32[1,4], index: 6, kind: input, shape index: {}]   ;;  %s384_s7 = inlined_call_operand.vmem [shape: f32[1,4], index: 7, kind: input, shape index: {}]   ;;  %s385_s8 = inlined_call_operand.vmem [shape: f32[1,4], index: 8, kind: input, shape index: {}]   ;;  %s386_s9 = inlined_call_operand.vmem [shape: f32[8,4], index: 9, kind: output, shape index: {}]  }
   0x1   :  { %s21_s11 = sshll.u32 %s377_s0, 4  ;;  %s22_s11 = int_to_ptr.hbm [resolvable:$true] %s21_s11 }
   0x2   :  { %15 = vsyncpa [#allocation5], 0  ;;  %s251_s12 = smov [#allocation2]   ;;  %s31_s16 = sshll.u32 %s378_s1, 4  ;;  %s32_s16 = int_to_ptr.hbm [resolvable:$true] %s31_s16 }
   0x3   :  { %s23_s13 = sshll.u32 %s251_s12, 4  ;;  %s252_s17 = smov [#allocation4]   ;;  %s24_s13 = int_to_ptr.vmem [resolvable:$true] %s23_s13 }
   0x4   :  { %26 = dma.hbm_to_vmem [thread:$0]  %s22_s11, 128, %s24_s13, [#allocation3]  }
   0x5   :  { %s33_s18 = sshll.u32 %s252_s17, 4  ;;  %s253_s19 = smov 128   ;;  %s34_s18 = int_to_ptr.vmem [resolvable:$true] %s33_s18 }
   0x6   :  { %s254_s20 = smov 8  }
   0x7   :  { %39 = dma.hbm_to_vmem [thread:$0]  %s32_s16, 256, %s34_s18, [#allocation5], %s253_s19, %s253_s19, %s254_s20  }
   0x8   :  { %247 = dma.done.wait [#allocation3], 128  }
   0x9   :  { %248 = vsyncadd [#allocation3], 4294967168 }
   0xa   :  { %249 = dma.done.wait [#allocation5], 256  }
   0xb   :  { %250 = vsyncadd [#allocation5], 4294967040  ;;  %v64_v0 = vld [vmem:[#allocation4 + $0x8] sm:$0xff]  ;;  %v63_v1 = vld [vmem:[#allocation4] sm:$0xff]  ;;  %vm69_vm0 = vcmask 130048   ;;  %vm106_vm1 = vcmask 523264  }
   0xc   :  { %87 = vmatpush.msra.mxu0 %v64_v0  ;;  %v62_v2 = vld [vmem:[#allocation2] sm:$0xff]  ;;  %v101_v3 = vld [vmem:[%s380_s3 + $0x38] sm:$0xff]  ;;  %v100_v4 = vld [vmem:[%s380_s3 + $0x30] sm:$0xff]  ;;  %vm177_vm2 = vcmask 31744  }
   0xd   :  { %118 = vmatpush.msra.mxu1 %v101_v3  ;;  %v99_v5 = vld [vmem:[%s380_s3 + $0x28] sm:$0xff]  ;;  %v98_v6 = vld [vmem:[%s380_s3 + $0x20] sm:$0xff]  ;;  %v97_v7 = vld [vmem:[%s380_s3 + $0x18] sm:$0xff] }
   0xe   :  { %88 = vmatpush.msra.mxu0 %v63_v1  ;;  %v96_v8 = vld [vmem:[%s380_s3 + $0x10] sm:$0xff]  ;;  %v95_v9 = vld [vmem:[%s380_s3 + $0x8] sm:$0xff]  ;;  %v94_v10 = vld [vmem:[%s380_s3] sm:$0xff] }
   0xf   :  { %185 = vmatmul.msk.f32.vlgmr.msra.gmra.mxu0 %vm69_vm0, %v62_v2  ;;  %119 = vmatpush.msra.mxu1 %v100_v4  ;;  %v138_v11 = vld [vmem:[%s382_s5 + $0x38] sm:$0xff]  ;;  %v137_v12 = vld [vmem:[%s382_s5 + $0x30] sm:$0xff]  ;;  %v136_v13 = vld [vmem:[%s382_s5 + $0x28] sm:$0xff] }
  0x10   :  { %154 = vmatpush.msra.mxu2 %v138_v11  ;;  %v135_v14 = vld [vmem:[%s382_s5 + $0x20] sm:$0xff]  ;;  %v134_v15 = vld [vmem:[%s382_s5 + $0x18] sm:$0xff]  ;;  %v133_v20 = vld [vmem:[%s382_s5 + $0x10] sm:$0xff] }
  0x11   :  { %120 = vmatpush.msra.mxu1 %v99_v5  ;;  %v192_v16 = vld [vmem:[%s379_s2] ss:$0 sm:$0xff]  ;;  %v132_v21 = vld [vmem:[%s382_s5 + $0x8] sm:$0xff] }
  0x12   :  { %155 = vmatpush.msra.mxu2 %v137_v12  ;;  %v131_v22 = vld [vmem:[%s382_s5] sm:$0xff] }
  0x13   :  { %121 = vmatpush.msra.mxu1 %v98_v6  ;;  %v193_v23 = vld [vmem:[%s381_s4] ss:$0 sm:$0xff] }
  0x14   :  { %156 = vmatpush.msra.mxu2 %v136_v13  ;;  %v194_v27 = vld [vmem:[%s383_s6] ss:$0 sm:$0xff] }
  0x15   :  { %122 = vmatpush.msra.mxu1 %v97_v7  ;;  %v195_v30 = vld [vmem:[%s384_s7] ss:$0 sm:$0xff] }
  0x16   :  { %157 = vmatpush.msra.mxu2 %v135_v14  ;;  %v196_v31 = vld [vmem:[%s385_s8] ss:$0 sm:$0xff] }
  0x17   :  { %123 = vmatpush.msra.mxu1 %v96_v8 }
  0x18   :  { %158 = vmatpush.msra.mxu2 %v134_v15 }
  0x19   :  { %124 = vmatpush.msra.mxu1 %v95_v9 }
  0x1a   :  { %159 = vmatpush.msra.mxu2 %v133_v20 }
  0x1b   :  { %125 = vmatpush.msra.mxu1 %v94_v10 }
  0x1c   :  { %160 = vmatpush.msra.mxu2 %v132_v21 }
  0x1e   :  { %161 = vmatpush.msra.mxu2 %v131_v22 }
  0x8c   :  { %v90_v17 = vpop.f32.mrf.mxu0 }
  0x8d   :  { %v91_v18 = vadd.f32 %v192_v16, %v90_v17 }
  0x8f   :  { %v93_v19 = vmax.f32 %v91_v18, 0.0 }
  0x91   :  { %186 = vmatmul.msk.f32.vlgmr.msra.gmra.mxu1 %vm106_vm1, %v93_v19 }
 0x10e   :  { %v127_v24 = vpop.f32.mrf.mxu1 }
 0x10f   :  { %v128_v25 = vadd.f32 %v193_v23, %v127_v24 }
 0x111   :  { %v130_v26 = vmax.f32 %v128_v25, 0.0 }
 0x113   :  { %187 = vmatmul.msk.f32.vlgmr.msra.gmra.mxu2 %vm106_vm1, %v130_v26 }
 0x196   :  { %v163_v28 = vpop.f32.mrf.mxu2 }
 0x197   :  { %v164_v29 = vadd.f32 %v194_v27, %v163_v28 }
 0x199   :  { %197 = vtanh.f32 %v164_v29 }
 0x19f   :  { %v198_v32 = vpop.eup %197 }
 0x1a0   :  { %v171_v33 = vmul.f32 %v198_v32, %v195_v30 }
 0x1a2   :  { %v176_v34 = vadd.f32 %v196_v31, %v171_v33 }
 0x1a4   :  { %178 = vst.msk [vmem:[%s386_s9] sm:$0xff] %vm177_vm2, %v176_v34 }
 0x1a5   :  { %183 = vsyncpa [#allocation3], 1 }
 0x1a6   :  { %184 = vsyncpa [#allocation5], 1 }

</bundles_post_ra>
